<compile_context>
chip_gen: v7x
topology: tpu7x:2x2x1
jax: 0.10.0
libtpu: 0.0.40
codegen_flags: <defaults>
</compile_context>

<pallas_src>
import math
import functools

import jax
import jax.numpy as jnp
from jax.experimental import pallas as pl


# ----------------------------------------------------------------------------
# Pallas kernel
# ----------------------------------------------------------------------------
def _pe_add_kernel(x_ref, pe_ref, o_ref, *, batch):
    # x_ref : (S, B*D) -- row s holds [x[s,0,:], x[s,1,:], ..., x[s,B-1,:]]
    # pe_ref: (S, D)   -- first S rows of the positional-encoding buffer
    x = x_ref[...]
    pe_row = jnp.tile(pe_ref[...], (1, batch))      # (S, B*D): pe[s,:] repeated per batch item
    o_ref[...] = (x + pe_row).astype(o_ref.dtype)
    # TODO(synk): dropout(p=0.1) omitted (identity / eval mode).


# ----------------------------------------------------------------------------
# Module "init" (register_buffer) + forward wrapper
# ----------------------------------------------------------------------------
def make_pe(d_model, max_len=40):
    """PyTorch PositionalEncoding.__init__ buffer, stored as (max_len, d_model)."""
    pos = jnp.arange(max_len, dtype=jnp.float32)[:, None]
    div = jnp.exp(jnp.arange(0, d_model, 2, dtype=jnp.float32)
                  * (-math.log(10000.0) / d_model))
    pe = jnp.zeros((max_len, d_model), jnp.float32)
    pe = pe.at[:, 0::2].set(jnp.sin(pos * div))
    pe = pe.at[:, 1::2].set(jnp.cos(pos * div))
    return pe


def positional_encoding(x, pe):
    """x: (S, B, D) seq-first (PyTorch layout). pe: (max_len, D). Returns x + pe[:S]."""
    S, B, D = x.shape
    assert S <= pe.shape[0] and D == pe.shape[1]

    x2 = x.reshape(S, B * D)          # free contiguous reshape -> lane-dense rows
    pe_s = pe[:S]                     # static slice of a constant buffer (folded at compile time)

    out2 = pl.pallas_call(
        functools.partial(_pe_add_kernel, batch=B),
        out_shape=jax.ShapeDtypeStruct((S, B * D), x.dtype),
        # No grid: single invocation, full blocks resident in VMEM.
        in_specs=[
            pl.BlockSpec((S, B * D), lambda *_: (0, 0)),   # whole activation block
            pl.BlockSpec((S, D), lambda *_: (0, 0)),       # pe[:S, :]
        ],
        out_specs=pl.BlockSpec((S, B * D), lambda *_: (0, 0)),
    )(x2, pe_s)

    return out2.reshape(S, B, D)


# ----------------------------------------------------------------------------
if __name__ == "__main__":
    key = jax.random.PRNGKey(0)
    S, B, D = 8, 4, 32        # seq=8, batch=4, d_model=32  (B*D = 128 -> full-lane rows)
    MAX_LEN = 40

    pe = make_pe(D, MAX_LEN)                       # module buffer (built once, like __init__)
    x = jax.random.normal(key, (S, B, D), jnp.float32)

    fwd = jax.jit(lambda t: positional_encoding(t, pe))
    out = fwd(x)
    jax.block_until_ready(out)

    # pure-JAX reference (eval-mode dropout == identity)
    ref = x + pe[:S][:, None, :]
    assert out.shape == (S, B, D), out.shape
    assert bool(jnp.allclose(out, ref, atol=1e-6, rtol=1e-6)), \
        float(jnp.max(jnp.abs(out - ref)))
    print("KERNEL_OK")
</pallas_src>

<mosaic_0001>
module attributes {stable_mosaic.version = 11 : i64} {
  func.func @_pe_add_kernel(%arg0: memref<8x128xf32, #tpu.memory_space<vmem>>, %arg1: memref<8x32xf32, #tpu.memory_space<vmem>>, %arg2: memref<8x128xf32, #tpu.memory_space<vmem>>) attributes {dimension_semantics = [], scalar_prefetch = 0 : i64, scratch_operands = 0 : i64, tpu.core_type = #tpu.core_type<tc>} {
    %c0 = arith.constant 0 : index
    %c0_0 = arith.constant 0 : index
    %0 = vector.load %arg0[%c0, %c0_0] : memref<8x128xf32, #tpu.memory_space<vmem>>, vector<8x128xf32>
    %c0_1 = arith.constant 0 : index
    %c0_2 = arith.constant 0 : index
    %1 = vector.load %arg1[%c0_1, %c0_2] : memref<8x32xf32, #tpu.memory_space<vmem>>, vector<8x32xf32>
    %2 = tpu.concatenate %1, %1, %1, %1 in 1 : vector<8x32xf32>, vector<8x32xf32>, vector<8x32xf32>, vector<8x32xf32> -> vector<8x128xf32>
    %3 = arith.addf %0, %2 : vector<8x128xf32>
    %c0_3 = arith.constant 0 : index
    %c0_4 = arith.constant 0 : index
    %4 = vector.load %arg2[%c0_3, %c0_4] : memref<8x128xf32, #tpu.memory_space<vmem>>, vector<8x128xf32>
    tpu.vector_store %arg2[%c0_3, %c0_4], %3 {strides = array<i32>} : memref<8x128xf32, #tpu.memory_space<vmem>>, vector<8x128xf32>,
    return
  }
}

</mosaic_0001>

<bundles_post_ra>
// kernel: _lambda_.1
= control target key start
LH: loop header
LB: loop body
LE: loop exit
PB: predicated region body
PF: predicated region fallthrough
CT: control target
= control target key end

     0   :  { %s38_s11 = smov 32   ;;  %s39_s12 = smov 96   ;;  %vm23_vm0 = vcmask 261120   ;;  %vm25_vm1 = vcmask 523264   ;;  %vm27_vm2 = vcmask 785408   ;;  %s65_s1 = inlined_call_operand.vmem [shape: f32[8,32], index: 1, kind: input, shape index: {}]   ;;  %s66_s0 = inlined_call_operand.vmem [shape: f32[8,128], index: 0, kind: input, shape index: {}]   ;;  %s67_s2 = inlined_call_operand.vmem [shape: f32[8,128], index: 2, kind: output, shape index: {}]  }
   0x1   :  { %v12_v0 = vld [vmem:[%s65_s1] sm:$0xff]  ;;  %s40_s13 = smov 64  }
   0x2   :  { %14 = vrot.lane.b32.xlu0 %v12_v0, %s38_s11  ;;  %20 = vrot.lane.b32.xlu1 %v12_v0, %s39_s12  ;;  %v11_v5 = vld [vmem:[%s66_s0] sm:$0xff] }
   0x6   :  { %17 = vrot.lane.b32.xlu0 %v12_v0, %s40_s13 }
  0x74   :  { %v15_v1 = vpop.permute.xlu0 %14  ;;  %v21_v2 = vpop.permute.xlu1 %20 }
  0x75   :  { %v24_v3 = vsel %vm23_vm0, %v12_v0, %v15_v1 }
  0x78   :  { %v18_v4 = vpop.permute.xlu0 %17 }
  0x79   :  { %v26_v6 = vsel %vm25_vm1, %v24_v3, %v18_v4 }
  0x7a   :  { %v28_v7 = vsel %vm27_vm2, %v26_v6, %v21_v2 }
  0x7b   :  { %v29_v8 = vadd.f32 %v28_v7, %v11_v5 }
  0x7d   :  { %30 = vst [vmem:[%s67_s2] sm:$0xff] %v29_v8 }

</bundles_post_ra>
